<compile_context>
chip_gen: v6e
topology: v6e:2x2x1
jax: 0.10.0
libtpu: 0.0.40
codegen_flags: <defaults>
</compile_context>

<pallas_src>
import functools

import jax
import jax.numpy as jnp
from jax.experimental import pallas as pl
from jax.experimental.pallas import tpu as pltpu


def _round_up(x, m):
    return ((x + m - 1) // m) * m


def _svdlinear_kernel(x_ref, wT_ref, xa_ref, bT_ref, bias2_ref, o_ref):
    """Grid = (M tiles, N tiles, K tiles); K innermost ("arbitrary") reduction axis.

    The f32 output block is the accumulator: its block index is constant along k,
    so Pallas keeps it VMEM-resident across the whole reduction (no scratch needed).
    xa / bT / bias tiles have k-invariant block indices, so they are DMA'd only when
    their block index changes, not on every k step.
    """
    k = pl.program_id(2)

    @pl.when(k == 0)
    def _():
        o_ref[...] = jnp.zeros_like(o_ref)

    # Frozen base linear path: bf16 operands on the MXU, f32 accumulate.
    o_ref[...] += jnp.dot(x_ref[...], wT_ref[...],
                          preferred_element_type=jnp.float32)

    @pl.when(k == pl.num_programs(2) - 1)
    def _():
        # LoRA epilogue: xa = x @ (A E) precomputed outside the hot loop.
        # bias2 already holds 2*bias (bias added twice by the module's forward).
        o_ref[...] += jnp.dot(xa_ref[...], bT_ref[...],
                              preferred_element_type=jnp.float32) + bias2_ref[...]


def prepare_svdlinear_params(weight, bias, lora_A, lora_E, lora_B, *, r,
                             tn=512, tk=512, compute_dtype=jnp.bfloat16):
    """One-time (parameter-load-time) prep.

    Transposes W, folds lora_E into lora_A, casts everything to the MXU compute
    dtype and zero-pads to lane-dense (8, 128)-aligned buffers.  Do NOT call this in
    the per-step forward path -- the whole point is to avoid re-writing/re-reading a
    padded copy of the frozen weight in HBM on every forward.
    """
    out_f, in_f = weight.shape
    cd = compute_dtype

    r_pad = max(128, _round_up(r, 128))
    tk_e = min(tk, _round_up(in_f, 128))
    tn_e = min(tn, _round_up(out_f, 128))
    N_r = _round_up(out_f, 128)
    # v7x has 2 TensorCores: keep >= 2 tiles on the N "parallel" axis when the output
    # width allows it, so the grid shards across both cores even if the M axis
    # collapses to a single tile.  (On 1-TC chips this only costs a modest extra
    # x re-stream, and for typical ViT widths >= 2 tiles exist anyway.)
    if N_r // tn_e < 2 and N_r >= 256:
        tn_e = _round_up(N_r // 2, 128)
    K_p = _round_up(in_f, tk_e)
    N_p = _round_up(out_f, tn_e)

    wT = weight.T                               # (in, out)
    ae = lora_A[:, :r] @ lora_E[:r, :r]         # fold E into A once: (in, r)
    bT = lora_B[:, :r].T                        # (r, out)

    wT_p = jnp.zeros((K_p, N_p), cd).at[:in_f, :out_f].set(wT.astype(cd))
    ae_p = jnp.zeros((K_p, r_pad), cd).at[:in_f, :r].set(ae.astype(cd))
    bT_p = jnp.zeros((r_pad, N_p), cd).at[:r, :out_f].set(bT.astype(cd))
    # Module adds bias twice -> fold the factor of 2 here (frees a VPU mul per tile).
    bias2_p = jnp.zeros((1, N_p), jnp.float32).at[0, :out_f].set(
        2.0 * bias.astype(jnp.float32))

    return dict(wT_p=wT_p, ae_p=ae_p, bT_p=bT_p, bias2_p=bias2_p,
                in_features=int(in_f), out_features=int(out_f),
                tn_e=int(tn_e), tk_e=int(tk_e), r_pad=int(r_pad),
                compute_dtype=cd)


@functools.partial(
    jax.jit,
    static_argnames=("in_features", "out_features", "tn_e", "tk_e", "r_pad",
                     "tm", "compute_dtype"))
def _svdlinear_apply(x, wT_p, ae_p, bT_p, bias2_p, *, in_features, out_features,
                     tn_e, tk_e, r_pad, tm=512, compute_dtype=jnp.bfloat16):
    M = x.shape[0]
    out_dtype = x.dtype
    cd = compute_dtype
    K_p, N_p = wT_p.shape

    tm_e = min(tm, _round_up(M, 8))
    M_p = _round_up(M, tm_e)

    # Only the activation is padded per call (parameters were padded at load time).
    x_cd = x.astype(cd)
    if (M_p, K_p) != x.shape:
        x_p = jnp.zeros((M_p, K_p), cd).at[:M, :in_features].set(x_cd)
    else:
        x_p = x_cd

    # LoRA left factor outside the hot K loop: tiny (M_p, r_pad) matmul in XLA,
    # bf16 operands / f32 accumulate, recast to bf16 for the in-kernel epilogue.
    xa_p = jnp.dot(x_p, ae_p, preferred_element_type=jnp.float32).astype(cd)

    grid = (M_p // tm_e, N_p // tn_e, K_p // tk_e)

    itemsize_c = jnp.dtype(cd).itemsize
    flops = int(2 * M_p * K_p * N_p + 2 * M_p * r_pad * N_p)
    bytes_accessed = int(
        (M_p * K_p + K_p * N_p + M_p * r_pad + r_pad * N_p) * itemsize_c
        + N_p * 4 + M_p * N_p * 4)

    # Double-buffered input tiles + resident f32 output block.
    vmem_est = (2 * (tm_e * tk_e + tk_e * tn_e + tm_e * r_pad + r_pad * tn_e)
                * itemsize_c + 2 * tn_e * 4 + 2 * tm_e * tn_e * 4)
    vmem_limit = int(min(max(vmem_est * 3 // 2, 32 * 1024 * 1024),
                         60 * 1024 * 1024))  # stay under v7x's 64 MiB physical

    out_p = pl.pallas_call(
        _svdlinear_kernel,
        out_shape=jax.ShapeDtypeStruct((M_p, N_p), jnp.float32),
        grid_spec=pltpu.PrefetchScalarGridSpec(
            num_scalar_prefetch=0,
            grid=grid,
            in_specs=[
                pl.BlockSpec((tm_e, tk_e), lambda i, j, k: (i, k)),    # x tile
                # NOTE: if profiling shows exposed weight DMA at large tiles, add
                # pipeline_mode=pl.Buffered(3) here (check v7x VMEM budget first).
                pl.BlockSpec((tk_e, tn_e), lambda i, j, k: (k, j)),    # W.T tile
                pl.BlockSpec((tm_e, r_pad), lambda i, j, k: (i, 0)),   # xa tile
                pl.BlockSpec((r_pad, tn_e), lambda i, j, k: (0, j)),   # B.T tile
                pl.BlockSpec((1, tn_e), lambda i, j, k: (0, j)),       # 2*bias tile
            ],
            out_specs=pl.BlockSpec((tm_e, tn_e), lambda i, j, k: (i, j)),
        ),
        compiler_params=pltpu.CompilerParams(
            dimension_semantics=("parallel", "parallel", "arbitrary"),
            vmem_limit_bytes=vmem_limit,
        ),
        cost_estimate=pl.CostEstimate(
            flops=flops, transcendentals=0, bytes_accessed=bytes_accessed),
    )(x_p, wT_p, xa_p, bT_p, bias2_p)

    # Skip the extra output pass entirely when no padding / no cast is needed.
    if M_p == M and N_p == out_features and out_dtype == jnp.float32:
        return out_p
    return out_p[:M, :out_features].astype(out_dtype)


def svdlinear_forward(x, params, *, tm=512):
    """Per-call forward.  `params` comes from prepare_svdlinear_params()."""
    return _svdlinear_apply(
        x, params["wT_p"], params["ae_p"], params["bT_p"], params["bias2_p"],
        in_features=params["in_features"], out_features=params["out_features"],
        tn_e=params["tn_e"], tk_e=params["tk_e"], r_pad=params["r_pad"],
        tm=tm, compute_dtype=params["compute_dtype"])


if __name__ == "__main__":
    # Small shapes consistent with an SVDLinear wrapping nn.Linear(in, out):
    batch, seq = 2, 8
    in_features, out_features = 32, 64
    r_req = 8
    r = min(r_req, in_features, out_features)   # update_layer: r = min(r, in, out)
    rmax = min(in_features, out_features)       # parameters allocated at rmax

    key = jax.random.PRNGKey(0)
    kx, kw, kb, ka, ke, kbb = jax.random.split(key, 6)

    # Deterministic synthetic parameters (shapes from AdaLoraLayer.update_layer).
    # (reset_lora_parameters would zero lora_E; use randn so the LoRA path is non-trivial.)
    x = jax.random.normal(kx, (batch * seq, in_features), dtype=jnp.float32)
    weight = jax.random.normal(kw, (out_features, in_features), dtype=jnp.float32) * 0.05
    bias = jax.random.normal(kb, (out_features,), dtype=jnp.float32) * 0.1
    lora_A = jax.random.normal(ka, (in_features, rmax), dtype=jnp.float32) * 0.02
    lora_E = jax.random.normal(ke, (rmax, rmax), dtype=jnp.float32) * 0.02
    lora_B = jax.random.normal(kbb, (out_features, rmax), dtype=jnp.float32) * 0.02

    # One-time parameter prep (load time), then the cheap per-call forward.
    params = prepare_svdlinear_params(weight, bias, lora_A, lora_E, lora_B, r=r)
    out = svdlinear_forward(x, params)
    out = jax.block_until_ready(out)
    assert out.shape == (batch * seq, out_features)

    # Module-exact f32 reference (loose tolerance absorbs the bf16 operand cast).
    ref = (x @ weight.T + bias) \
        + (x @ lora_A[:, :r] @ lora_E[:r, :r] @ lora_B[:, :r].T) \
        + bias
    assert jnp.allclose(out, ref, atol=3e-2, rtol=3e-2), "mismatch vs f32 reference"

    # Matched-precision reference (bf16 operands, f32 accumulation) — tight check.
    bf = lambda a: a.astype(jnp.bfloat16)
    ae_f = lora_A[:, :r] @ lora_E[:r, :r]
    base_bf = jnp.dot(bf(x), bf(weight.T), preferred_element_type=jnp.float32)
    xa_bf = jnp.dot(bf(x), bf(ae_f),
                    preferred_element_type=jnp.float32).astype(jnp.bfloat16)
    lora_bf = jnp.dot(xa_bf, bf(lora_B[:, :r].T),
                      preferred_element_type=jnp.float32)
    ref_bf = base_bf + lora_bf + 2.0 * bias
    assert jnp.allclose(out, ref_bf, atol=2e-3, rtol=2e-3), \
        "mismatch vs matched-precision reference"

    print("KERNEL_OK")
</pallas_src>

<mosaic_0001>
module attributes {stable_mosaic.version = 11 : i64} {
  func.func @_svdlinear_kernel(%arg0: i32, %arg1: i32, %arg2: i32, %arg3: memref<16x128xbf16, #tpu.memory_space<vmem>>, %arg4: memref<128x128xbf16, #tpu.memory_space<vmem>>, %arg5: memref<16x128xbf16, #tpu.memory_space<vmem>>, %arg6: memref<128x128xbf16, #tpu.memory_space<vmem>>, %arg7: memref<1x128xf32, #tpu.memory_space<vmem>>, %arg8: memref<16x128xf32, #tpu.memory_space<vmem>>) attributes {dimension_semantics = [#tpu.dimension_semantics<parallel>, #tpu.dimension_semantics<parallel>, #tpu.dimension_semantics<arbitrary>], iteration_bounds = array<i64: 1, 1, 1>, scalar_prefetch = 0 : i64, scratch_operands = 0 : i64, tpu.core_type = #tpu.core_type<tc>, window_params = [{transform_indices = @transform_0, window_bounds = array<i64: 16, 128>}, {transform_indices = @transform_1, window_bounds = array<i64: 128, 128>}, {transform_indices = @transform_2, window_bounds = array<i64: 16, 128>}, {transform_indices = @transform_3, window_bounds = array<i64: 128, 128>}, {transform_indices = @transform_4, window_bounds = array<i64: 1, 128>}, {transform_indices = @transform_5, window_bounds = array<i64: 16, 128>}]} {
    %c0_i32 = arith.constant 0 : i32
    %0 = arith.cmpi eq, %arg2, %c0_i32 : i32
    %1 = arith.extui %0 : i1 to i32
    %c0_i32_0 = arith.constant 0 : i32
    %2 = arith.cmpi ne, %1, %c0_i32_0 : i32
    scf.if %2 {
      %cst_10 = arith.constant 0.000000e+00 : f32
      %12 = vector.broadcast %cst_10 : f32 to vector<16x128xf32>
      %c0_11 = arith.constant 0 : index
      %c0_12 = arith.constant 0 : index
      %13 = vector.load %arg8[%c0_11, %c0_12] : memref<16x128xf32, #tpu.memory_space<vmem>>, vector<16x128xf32>
      tpu.vector_store %arg8[%c0_11, %c0_12], %12 {strides = array<i32>} : memref<16x128xf32, #tpu.memory_space<vmem>>, vector<16x128xf32>,
    } else {
    }
    %c0 = arith.constant 0 : index
    %c0_1 = arith.constant 0 : index
    %3 = vector.load %arg8[%c0, %c0_1] : memref<16x128xf32, #tpu.memory_space<vmem>>, vector<16x128xf32>
    %c0_2 = arith.constant 0 : index
    %c0_3 = arith.constant 0 : index
    %4 = vector.load %arg3[%c0_2, %c0_3] : memref<16x128xbf16, #tpu.memory_space<vmem>>, vector<16x128xbf16>
    %c0_4 = arith.constant 0 : index
    %c0_5 = arith.constant 0 : index
    %5 = vector.load %arg4[%c0_4, %c0_5] : memref<128x128xbf16, #tpu.memory_space<vmem>>, vector<128x128xbf16>
    %cst = arith.constant dense<0.000000e+00> : vector<16x128xf32>
    %6 = tpu.matmul %4, %5, %cst {dimension_numbers = #tpu.dot_dimension_numbers<[1], [0], [0], [1], [0, 0, 1, 1], [], []>} : vector<16x128xbf16>, vector<128x128xbf16>, vector<16x128xf32> -> vector<16x128xf32>
    %7 = arith.addf %3, %6 : vector<16x128xf32>
    %c0_6 = arith.constant 0 : index
    %c0_7 = arith.constant 0 : index
    %8 = vector.load %arg8[%c0_6, %c0_7] : memref<16x128xf32, #tpu.memory_space<vmem>>, vector<16x128xf32>
    tpu.vector_store %arg8[%c0_6, %c0_7], %7 {strides = array<i32>} : memref<16x128xf32, #tpu.memory_space<vmem>>, vector<16x128xf32>,
    %c0_i32_8 = arith.constant 0 : i32
    %9 = arith.cmpi eq, %arg2, %c0_i32_8 : i32
    %10 = arith.extui %9 : i1 to i32
    %c0_i32_9 = arith.constant 0 : i32
    %11 = arith.cmpi ne, %10, %c0_i32_9 : i32
    scf.if %11 {
      %c0_10 = arith.constant 0 : index
      %c0_11 = arith.constant 0 : index
      %12 = vector.load %arg8[%c0_10, %c0_11] : memref<16x128xf32, #tpu.memory_space<vmem>>, vector<16x128xf32>
      %c0_12 = arith.constant 0 : index
      %c0_13 = arith.constant 0 : index
      %13 = vector.load %arg5[%c0_12, %c0_13] : memref<16x128xbf16, #tpu.memory_space<vmem>>, vector<16x128xbf16>
      %c0_14 = arith.constant 0 : index
      %c0_15 = arith.constant 0 : index
      %14 = vector.load %arg6[%c0_14, %c0_15] : memref<128x128xbf16, #tpu.memory_space<vmem>>, vector<128x128xbf16>
      %cst_16 = arith.constant dense<0.000000e+00> : vector<16x128xf32>
      %15 = tpu.matmul %13, %14, %cst_16 {dimension_numbers = #tpu.dot_dimension_numbers<[1], [0], [0], [1], [0, 0, 1, 1], [], []>} : vector<16x128xbf16>, vector<128x128xbf16>, vector<16x128xf32> -> vector<16x128xf32>
      %c0_17 = arith.constant 0 : index
      %c0_18 = arith.constant 0 : index
      %16 = vector.load %arg7[%c0_17, %c0_18] : memref<1x128xf32, #tpu.memory_space<vmem>>, vector<1x128xf32>
      %17 = vector.broadcast %16 : vector<1x128xf32> to vector<16x128xf32>
      %18 = arith.addf %15, %17 : vector<16x128xf32>
      %19 = arith.addf %12, %18 : vector<16x128xf32>
      %c0_19 = arith.constant 0 : index
      %c0_20 = arith.constant 0 : index
      %20 = vector.load %arg8[%c0_19, %c0_20] : memref<16x128xf32, #tpu.memory_space<vmem>>, vector<16x128xf32>
      tpu.vector_store %arg8[%c0_19, %c0_20], %19 {strides = array<i32>} : memref<16x128xf32, #tpu.memory_space<vmem>>, vector<16x128xf32>,
    } else {
    }
    return
  }
  func.func @transform_0(%arg0: i32, %arg1: i32, %arg2: i32) -> (i32, i32) {
    %c0_i32 = arith.constant 0 : i32
    return %arg0, %arg2 : i32, i32
  }
  func.func @transform_1(%arg0: i32, %arg1: i32, %arg2: i32) -> (i32, i32) {
    %c0_i32 = arith.constant 0 : i32
    return %arg2, %arg1 : i32, i32
  }
  func.func @transform_2(%arg0: i32, %arg1: i32, %arg2: i32) -> (i32, i32) {
    %c0_i32 = arith.constant 0 : i32
    %c0_i32_0 = arith.constant 0 : i32
    return %arg0, %c0_i32 : i32, i32
  }
  func.func @transform_3(%arg0: i32, %arg1: i32, %arg2: i32) -> (i32, i32) {
    %c0_i32 = arith.constant 0 : i32
    %c0_i32_0 = arith.constant 0 : i32
    return %c0_i32, %arg1 : i32, i32
  }
  func.func @transform_4(%arg0: i32, %arg1: i32, %arg2: i32) -> (i32, i32) {
    %c0_i32 = arith.constant 0 : i32
    %c0_i32_0 = arith.constant 0 : i32
    return %c0_i32, %arg1 : i32, i32
  }
  func.func @transform_5(%arg0: i32, %arg1: i32, %arg2: i32) -> (i32, i32) {
    %c0_i32 = arith.constant 0 : i32
    return %arg0, %arg1 : i32, i32
  }
}

</mosaic_0001>

<bundles_post_ra>
// kernel: _svdlinear_apply.1
= control target key start
LH: loop header
LB: loop body
LE: loop exit
PB: predicated region body
PF: predicated region fallthrough
CT: control target
= control target key end

     0   :  { %v414_v1 = vmov 0.0   ;;  %vm415_vm0 = vmmov 0   ;;  %s509_s0 = inlined_call_operand.vmem [shape: bf16[16,128], index: 0, kind: input, shape index: {}]   ;;  %s510_s1 = inlined_call_operand.vmem [shape: bf16[128,128], index: 1, kind: input, shape index: {}]   ;;  %s511_s2 = inlined_call_operand.vmem [shape: bf16[16,128], index: 2, kind: input, shape index: {}]   ;;  %s512_s3 = inlined_call_operand.vmem [shape: bf16[128,128], index: 3, kind: input, shape index: {}]   ;;  %s513_s4 = inlined_call_operand.vmem [shape: f32[1,128], index: 4, kind: input, shape index: {}]   ;;  %s514_s5 = inlined_call_operand.hbm [shape: f32[16,128], index: 5, kind: output, shape index: {}]  }
   0x1   :  { %v374_v0 = vld [vmem:[%s510_s1 + $0x38] sm:$0xff]   ;;  %329 = vmatprep.subr.bf16.mxu0 %v414_v1  ;;  %349 = vmatprep.subr.bf16.mxu1 %v414_v1  ;;  %v376_v3 = vld [vmem:[%s510_s1 + $0x30] sm:$0xff]   ;;  %v378_v5 = vld [vmem:[%s510_s1 + $0x28] sm:$0xff]  }
   0x2   :  { %v375_v2 = vld [vmem:[%s512_s3 + $0x38] sm:$0xff]   ;;  %330 = vmatpush3.bf16.msra.mxu0 %v374_v0  ;;  %345 = vmatprep.mubr.msk.bf16.mxu0 %vm415_vm0, %v414_v1  ;;  %v377_v4 = vld [vmem:[%s512_s3 + $0x30] sm:$0xff]   ;;  %v379_v6 = vld [vmem:[%s512_s3 + $0x28] sm:$0xff]  }
   0x3   :  { %350 = vmatpush3.bf16.msra.mxu1 %v375_v2  ;;  %331 = vmatprep.subr.bf16.mxu0 %v414_v1  ;;  %v380_v7 = vld [vmem:[%s510_s1 + $0x20] sm:$0xff]   ;;  %v382_v9 = vld [vmem:[%s510_s1 + $0x18] sm:$0xff]   ;;  %v384_v11 = vld [vmem:[%s510_s1 + $0x10] sm:$0xff]  }
   0x4   :  { %351 = vmatprep.subr.bf16.mxu1 %v414_v1  ;;  %365 = vmatprep.mubr.msk.bf16.mxu1 %vm415_vm0, %v414_v1  ;;  %v381_v8 = vld [vmem:[%s512_s3 + $0x20] sm:$0xff]   ;;  %v383_v10 = vld [vmem:[%s512_s3 + $0x18] sm:$0xff]  }
   0x6   :  { %332 = vmatpush3.bf16.msra.mxu0 %v376_v3 }
   0x7   :  { %352 = vmatpush3.bf16.msra.mxu1 %v377_v4  ;;  %333 = vmatprep.subr.bf16.mxu0 %v414_v1 }
   0x8   :  { %353 = vmatprep.subr.bf16.mxu1 %v414_v1 }
   0xa   :  { %334 = vmatpush3.bf16.msra.mxu0 %v378_v5 }
   0xb   :  { %354 = vmatpush3.bf16.msra.mxu1 %v379_v6  ;;  %335 = vmatprep.subr.bf16.mxu0 %v414_v1 }
   0xc   :  { %355 = vmatprep.subr.bf16.mxu1 %v414_v1 }
   0xe   :  { %336 = vmatpush3.bf16.msra.mxu0 %v380_v7 }
   0xf   :  { %356 = vmatpush3.bf16.msra.mxu1 %v381_v8  ;;  %337 = vmatprep.subr.bf16.mxu0 %v414_v1 }
  0x10   :  { %357 = vmatprep.subr.bf16.mxu1 %v414_v1 }
  0x12   :  { %338 = vmatpush3.bf16.msra.mxu0 %v382_v9 }
  0x13   :  { %10 = vsyncpa [#allocation3], 0  ;;  %358 = vmatpush3.bf16.msra.mxu1 %v383_v10  ;;  %339 = vmatprep.subr.bf16.mxu0 %v414_v1  ;;  %v385_v12 = vld [vmem:[%s512_s3 + $0x10] sm:$0xff]   ;;  %v386_v13 = vld [vmem:[%s510_s1 + $0x8] sm:$0xff]  }
  0x14   :  { %359 = vmatprep.subr.bf16.mxu1 %v414_v1  ;;  %v387_v14 = vld [vmem:[%s512_s3 + $0x8] sm:$0xff]   ;;  %v388_v15 = vld [vmem:[%s510_s1] sm:$0xff]  }
  0x15   :  { %v389_v16 = vld [vmem:[%s512_s3] sm:$0xff]  }
  0x16   :  { %340 = vmatpush3.bf16.msra.mxu0 %v384_v11  ;;  %v390_v17 = vld [vmem:[%s509_s0] sm:$0xff]   ;;  %s416_s0 = smov [#allocation2]  }
  0x17   :  { %360 = vmatpush3.bf16.msra.mxu1 %v385_v12  ;;  %341 = vmatprep.subr.bf16.mxu0 %v414_v1  ;;  %v391_v18 = vld [vmem:[%s511_s2] sm:$0xff]   ;;  %s281_s3 = sshll.u32 %s416_s0, 4  ;;  %s282_s3 = int_to_ptr.vmem [resolvable:$true] %s281_s3 }
  0x18   :  { %361 = vmatprep.subr.bf16.mxu1 %v414_v1  ;;  %v301_v19 = vld [vmem:[%s513_s4] ss:$0 sm:$0xff]  ;;  %s392_s2 = scalar_lea.vmem %s282_s3, 256  ;;  %p397_p1 = scmp.lt.s32.totalorder %s282_s3, %s282_s3 }
  0x19   :  { %p393_p0 = scmp.ne.s32.totalorder %s282_s3, %s392_s2  ;;  %p398_p2 = scmp.lt.s32.totalorder %s392_s2, %s392_s2 }
  0x1a   :  { %342 = vmatpush3.bf16.msra.mxu0 %v386_v13 }
  0x1b   :  { %362 = vmatpush3.bf16.msra.mxu1 %v387_v14  ;;  %343 = vmatprep.subr.bf16.mxu0 %v414_v1  ;;  %p399_p3 = por %p398_p2, %p397_p1 }
  0x1c   :  { %363 = vmatprep.subr.bf16.mxu1 %v414_v1 }
  0x1d   :  { %p400_p4 = pnand %p399_p3, %p393_p0 }
  0x1e   :  { %344 = vmatpush3.bf16.msra.mxu0 %v388_v15 }
  0x1f   :  { %364 = vmatpush3.bf16.msra.mxu1 %v389_v16 }
  0x21   :  { %346 = vmatmul.mubr.bf16.vlgmr.msra.gmra.mxu0 %v390_v17 }
  0x22   :  { %366 = vmatmul.mubr.bf16.vlgmr.msra.gmra.mxu1 %v391_v18 }
  0xe1   :  { %v136_v20 = vpop.f32.mrf.mxu0 }
  0xe2   :  { %v265_v21 = vpop.f32.mrf.mxu1 }
  0xe3   :  { %v347_v22 = vpop.f32.mrf.mxu0  ;;  %v266_v23 = vadd.f32 %v301_v19, %v265_v21 }
  0xe4   :  { %v367_v24 = vpop.f32.mrf.mxu1 }
  0xe5   :  { %v272_v25 = vadd.f32 %v266_v23, %v136_v20  ;;  %v139_v26 = vpop.f32.mrf.mxu0 }
  0xe6   :  { %v268_v27 = vpop.f32.mrf.mxu1 }
  0xe7   :  { %274 = vst [vmem:[#allocation2] sm:$0xff] %v272_v25  ;;  %v348_v28 = vpop.f32.mrf.mxu0  ;;  %v269_v29 = vadd.f32 %v301_v19, %v268_v27 }
  0xe8   :  { %v368_v30 = vpop.f32.mrf.mxu1 }
  0xe9   :  { %v273_v31 = vadd.f32 %v269_v29, %v139_v26 }
  0xeb   :  { %275 = vst [vmem:[#allocation2 + $0x8] sm:$0xff] %v273_v31 }
  0xec   :  { %403 = shalt.err (!%p400_p4)
}
  0xed   :  { %s417_s4 = smov 128   ;;  %s418_s30 = smov 8  }
  0xee   :  { %287 = dma.vmem_to_hbm [thread:$0]  %s282_s3, 256, %s514_s5, [#allocation3], %s417_s4, %s417_s4, %s418_s30  }
  0xef   :  { %412 = dma.done.wait [#allocation3], 256  }
  0xf0   :  { %413 = vsyncadd [#allocation3], 4294967040 }
  0xf1   :  { %291 = vsyncpa [#allocation3], 1 }

</bundles_post_ra>
